<compile_context>
chip_gen: v5e
topology: v5e:2x2
jax: 0.10.0
libtpu: 0.0.40
codegen_flags: <defaults>
</compile_context>

<pallas_src>
import jax
import jax.numpy as jnp
from jax.experimental import pallas as pl
from jax.experimental.pallas import tpu as pltpu


def _rescale_kernel(w_ref, x_ref, o_ref):
    # w_ref: (tr, 1) per-row scale tile; x_ref/o_ref: (tr, hw_tile).
    # One vld + one vmul + one vst per output vreg: the binding resource is
    # HBM/DMA, not any VLIW slot — no compute micro-optimization needed.
    o_ref[...] = w_ref[...] * x_ref[...]


def _vmem_capacity_bytes():
    try:
        return int(pltpu.get_tpu_info().vmem_capacity_bytes)
    except Exception:
        return 64 << 20  # conservative (v7x per-TC physical)


def _pick_tiles(nc, hw, itemsize, target_bytes):
    """Choose (row_tile, hw_tile, sublane_gran) for the (nc, hw) slab."""
    # Dtype-aware sublane granularity: 8 f32, 16 bf16, 32 int8/fp8.
    sub = 8 * max(1, 4 // itemsize)

    # Lane tile: largest multiple-of-128 divisor of hw such that even a
    # minimal-row block fits the byte target (bounds VMEM for huge hw).
    lanes_cap = max(128, (target_bytes // (sub * itemsize)) // 128 * 128)
    m = hw // 128
    d_best = 1
    for d in range(1, m + 1):
        if m % d == 0 and 128 * d <= lanes_cap:
            d_best = d
    hw_tile = 128 * d_best

    # Row tile: fill the remaining byte budget, sublane-aligned.
    tr = (target_bytes // (hw_tile * itemsize)) // sub * sub
    tr = int(min(max(tr, sub), nc))
    if tr < nc:
        # Keep enough row steps that both v7x TCs stream and prefetch of
        # block i+1 overlaps writeback of block i-1.
        min_row_steps = 8 if hw_tile == hw else 2
        while nc // tr < min_row_steps and tr > sub:
            tr = max(sub, ((tr // 2) // sub) * sub)
        # Prefer an exact divisor of nc (unmasked full-lane writeback), but
        # never shrink the block below ~half target; otherwise keep a ragged
        # last block (Pallas masks the partial writeback).
        t_floor = max(sub, ((tr // 2) // sub) * sub)
        for t in range(tr, t_floor - 1, -sub):
            if nc % t == 0:
                tr = t
                break
    return tr, hw_tile, sub


def rescale_forward(x, weight, *, target_block_bytes=None, donate_input=False,
                    force_pallas=False):
    """x: (N, C, H, W); weight: (C, 1, 1). Returns weight * x (PyTorch semantics)."""
    N, C, H, W = x.shape
    NC, HW = N * C, H * W
    itemsize = jnp.dtype(x.dtype).itemsize
    total_bytes = NC * HW * itemsize

    # Fallback: non-lane-dense spatial axis, or tiny tensors where the fused
    # XLA multiply beats any pallas_call fixed cost (~0.35 us/step).
    if HW % 128 != 0 or (total_bytes < (2 << 20) and not force_pallas):
        return (weight[None].astype(x.dtype) * x).astype(x.dtype)

    capacity = _vmem_capacity_bytes()
    if target_block_bytes is None:
        # ~6 MiB blocks on v7x (64 MiB VMEM), ~4 MiB on v5e/v6e (128 MiB).
        target_block_bytes = (6 << 20) if capacity <= (80 << 20) else (4 << 20)

    tr, hw_tile, _ = _pick_tiles(NC, HW, itemsize, target_block_bytes)
    grid = (pl.cdiv(NC, tr), HW // hw_tile)

    # Explicit VMEM budget: 2 in + 2 out activation buffers, double-buffered
    # (lane-padded) weight tiles, plus slack. Keeps v5e above its 16 MiB
    # scoped default and stays well inside v7x's 64 MiB physical VMEM.
    block_bytes = tr * hw_tile * itemsize
    vmem_limit = 4 * block_bytes + 2 * tr * 128 * itemsize + (4 << 20)
    vmem_limit = int(max(vmem_limit, 16 << 20))
    vmem_limit = int(min(vmem_limit, max(capacity - (16 << 20), 16 << 20)))

    # Glue (plain JAX): 2-D slab + per-row scale column.
    x2 = x.reshape(NC, HW)
    w_rows = jnp.broadcast_to(weight.reshape(1, C), (N, C)).reshape(NC, 1)
    w_rows = w_rows.astype(x.dtype)

    out2 = pl.pallas_call(
        _rescale_kernel,
        out_shape=jax.ShapeDtypeStruct((NC, HW), x.dtype),
        grid=grid,
        in_specs=[
            # Per-step weight tile: tiny DMA hidden under the activation DMA;
            # VMEM cost is fixed (tr/8 vregs) instead of scaling with N*C.
            pl.BlockSpec((tr, 1), lambda i, j: (i, 0)),
            # Multi-MiB lane-dense activation tiles, double-buffered.
            pl.BlockSpec((tr, hw_tile), lambda i, j: (i, j)),
        ],
        out_specs=pl.BlockSpec((tr, hw_tile), lambda i, j: (i, j)),
        compiler_params=pltpu.CompilerParams(
            dimension_semantics=("parallel", "parallel"),
            vmem_limit_bytes=vmem_limit,
        ),
        # Optional in-place update (halves HBM footprint) if the caller allows
        # donation of x.
        input_output_aliases=({1: 0} if donate_input else {}),
    )(w_rows, x2)

    return out2.reshape(N, C, H, W)


if __name__ == "__main__":
    key = jax.random.PRNGKey(0)
    kx, kw, kx2, kw2 = jax.random.split(key, 4)

    # --- Test 1: module-sized toy input (single-block fast path) -----------
    N, C, H, W = 2, 4, 16, 16
    x = jax.random.normal(kx, (N, C, H, W), dtype=jnp.float32)
    # Module init is torch.ones(C,1,1); perturb so the broadcast is exercised.
    weight = jnp.ones((C, 1, 1), dtype=jnp.float32) + \
        0.1 * jax.random.normal(kw, (C, 1, 1), dtype=jnp.float32)
    # At this size the XLA fallback would normally be taken; force the Pallas
    # path to validate it.
    out = jax.block_until_ready(rescale_forward(x, weight, force_pallas=True))
    ref = weight[None, :, :, :] * x
    assert out.shape == x.shape and out.dtype == x.dtype
    assert jnp.allclose(out, ref, atol=1e-6, rtol=1e-6)

    # --- Test 2: multi-step 2-D grid with a ragged last row block ----------
    # NC = 15 (not a multiple of the 8-row tile) and HW = 384 tiled into three
    # 128-lane blocks -> 2x3 grid, masked writeback on the final row block.
    N2, C2, H2, W2 = 3, 5, 16, 24
    x2 = jax.random.normal(kx2, (N2, C2, H2, W2), dtype=jnp.float32)
    w2 = jnp.ones((C2, 1, 1), dtype=jnp.float32) + \
        0.05 * jax.random.normal(kw2, (C2, 1, 1), dtype=jnp.float32)
    out2 = jax.block_until_ready(
        rescale_forward(x2, w2, force_pallas=True,
                        target_block_bytes=8 * 128 * 4))
    ref2 = w2[None, :, :, :] * x2
    assert out2.shape == x2.shape and out2.dtype == x2.dtype
    assert jnp.allclose(out2, ref2, atol=1e-6, rtol=1e-6)

    # --- Test 3: XLA fallback path (non-lane-dense HW) ----------------------
    x3 = jax.random.normal(kx, (2, 4, 5, 7), dtype=jnp.float32)
    out3 = jax.block_until_ready(rescale_forward(x3, weight))
    assert jnp.allclose(out3, weight[None] * x3, atol=1e-6, rtol=1e-6)

    print("KERNEL_OK")
</pallas_src>

<mosaic_0001>
module attributes {stable_mosaic.version = 11 : i64} {
  func.func @_rescale_kernel(%arg0: i32, %arg1: i32, %arg2: memref<8x1xf32, #tpu.memory_space<vmem>>, %arg3: memref<8x256xf32, #tpu.memory_space<vmem>>, %arg4: memref<8x256xf32, #tpu.memory_space<vmem>>) attributes {dimension_semantics = [#tpu.dimension_semantics<parallel>, #tpu.dimension_semantics<parallel>], iteration_bounds = array<i64: 1, 1>, scalar_prefetch = 0 : i64, scratch_operands = 0 : i64, tpu.core_type = #tpu.core_type<tc>, window_params = [{transform_indices = @transform_0, window_bounds = array<i64: 8, 1>}, {transform_indices = @transform_1, window_bounds = array<i64: 8, 256>}, {transform_indices = @transform_2, window_bounds = array<i64: 8, 256>}]} {
    %c0 = arith.constant 0 : index
    %c0_0 = arith.constant 0 : index
    %0 = vector.load %arg2[%c0, %c0_0] : memref<8x1xf32, #tpu.memory_space<vmem>>, vector<8x1xf32>
    %c0_1 = arith.constant 0 : index
    %c0_2 = arith.constant 0 : index
    %1 = vector.load %arg3[%c0_1, %c0_2] : memref<8x256xf32, #tpu.memory_space<vmem>>, vector<8x256xf32>
    %2 = vector.broadcast %0 : vector<8x1xf32> to vector<8x256xf32>
    %3 = arith.mulf %2, %1 : vector<8x256xf32>
    %c0_3 = arith.constant 0 : index
    %c0_4 = arith.constant 0 : index
    %4 = vector.load %arg4[%c0_3, %c0_4] : memref<8x256xf32, #tpu.memory_space<vmem>>, vector<8x256xf32>
    tpu.vector_store %arg4[%c0_3, %c0_4], %3 {strides = array<i32>} : memref<8x256xf32, #tpu.memory_space<vmem>>, vector<8x256xf32>,
    return
  }
  func.func @transform_0(%arg0: i32, %arg1: i32) -> (i32, i32) {
    %c0_i32 = arith.constant 0 : i32
    %c0_i32_0 = arith.constant 0 : i32
    return %arg0, %c0_i32 : i32, i32
  }
  func.func @transform_1(%arg0: i32, %arg1: i32) -> (i32, i32) {
    %c0_i32 = arith.constant 0 : i32
    return %arg0, %arg1 : i32, i32
  }
  func.func @transform_2(%arg0: i32, %arg1: i32) -> (i32, i32) {
    %c0_i32 = arith.constant 0 : i32
    return %arg0, %arg1 : i32, i32
  }
}

</mosaic_0001>

<bundles_post_ra>
// kernel: tpu_custom_call.1
= control target key start
LH: loop header
LB: loop body
LE: loop exit
PB: predicated region body
PF: predicated region fallthrough
CT: control target
= control target key end

     0   :  { %7 = vsyncpa [#allocation3], 0  ;;  %s138_s0 = inlined_call_operand.vmem [shape: f32[8,1], index: 0, kind: input, shape index: {}]   ;;  %s139_s1 = inlined_call_operand.hbm [shape: f32[8,256], index: 1, kind: input, shape index: {}]   ;;  %s140_s2 = inlined_call_operand.hbm [shape: f32[8,256], index: 2, kind: output, shape index: {}]  }
   0x1   :  { %8 = vsyncpa [#allocation4], 0  ;;  %s16_s11 = sshll.u32 %s139_s1, 4  ;;  %s111_s12 = smov [#allocation2]   ;;  %s17_s11 = int_to_ptr.hbm [resolvable:$true] %s16_s11 }
   0x2   :  { %s18_s13 = sshll.u32 %s111_s12, 4  ;;  %s19_s13 = int_to_ptr.vmem [resolvable:$true] %s18_s13 }
   0x3   :  { %21 = dma.hbm_to_vmem [thread:$0]  %s17_s11, 256, %s19_s13, [#allocation3]  }
   0x4   :  { %107 = dma.done.wait [#allocation3], 256  }
   0x5   :  { %108 = vsyncadd [#allocation3], 4294967040  ;;  %v112_v0 = vmov 0   ;;  %v26_v1 = vld [vmem:[%s138_s0] sm:$0xff]  ;;  %v28_v3 = vld [vmem:[#allocation2 + $0x8] sm:$0xff]  ;;  %s113_s16 = smov [#allocation5]  }
   0x6   :  { %58 = vset.pattern.permute.xlu0 %v112_v0  ;;  %v27_v2 = vld [vmem:[#allocation2] sm:$0xff]  ;;  %s43_s17 = sshll.u32 %s113_s16, 4  ;;  %s45_s19 = sshll.u32 %s140_s2, 4  ;;  %s44_s17 = int_to_ptr.vmem [resolvable:$true] %s43_s17  ;;  %s46_s19 = int_to_ptr.hbm [resolvable:$true] %s45_s19 }
   0x7   :  { %31 = vperm.xlu0 %58, %v26_v1  }
  0x79   :  { %v32_v4 = vpop.permute.xlu0 %31 }
  0x7a   :  { %v34_v5 = vmul.f32 %v32_v4, %v27_v2  ;;  %v35_v6 = vmul.f32 %v32_v4, %v28_v3 }
  0x7c   :  { %36 = vst [vmem:[#allocation5] sm:$0xff] %v34_v5 }
  0x7d   :  { %37 = vst [vmem:[#allocation5 + $0x8] sm:$0xff] %v35_v6 }
  0x7e   :  { %48 = dma.vmem_to_hbm [thread:$0]  %s44_s17, 256, %s46_s19, [#allocation4]  }
  0x7f   :  { %109 = dma.done.wait [#allocation4], 256  }
  0x80   :  { %110 = vsyncadd [#allocation4], 4294967040 }
  0x81   :  { %53 = vsyncpa [#allocation3], 1 }
  0x82   :  { %54 = vsyncpa [#allocation4], 1 }

</bundles_post_ra>
